<compile_context>
chip_gen: v7x
topology: tpu7x:2x2x1
jax: 0.10.0
libtpu: 0.0.40
codegen_flags: <defaults>
</compile_context>

<pallas_src>
import jax
import jax.numpy as jnp
from jax.experimental import pallas as pl
from jax.experimental.pallas import tpu as pltpu

# ~2 MiB of f32 per block; fits default scoped VMEM with double buffering on
# all of v5e / v6e / v7x (2 arrays x 2 buffers x 2 MiB = 8 MiB + tiny scale/bias).
_TARGET_BLOCK_ELEMS = 512 * 1024


def _normalize_kernel(x_ref, scale_ref, bias_ref, o_ref):
    # x_ref/o_ref: (R_blk, L_blk) tiles; scale_ref/bias_ref: (R_blk, 1) f32.
    x = x_ref[...].astype(jnp.float32)
    o_ref[...] = (x * scale_ref[...] + bias_ref[...]).astype(o_ref.dtype)


def _largest_dividing_multiple(extent, unit, cap):
    """Largest multiple of `unit` that divides `extent` and is <= cap (or 0)."""
    best = 0
    k = min(cap, extent) // unit
    while k > 0:
        cand = k * unit
        if extent % cand == 0:
            best = cand
            break
        k -= 1
    return best


def _pick_block(rows, lanes, target_elems=_TARGET_BLOCK_ELEMS):
    """Pick (R_blk, L_blk) honoring the TPU (8, 128) block-shape constraints.

    Prefers block edges that divide the array extents so every tile is full
    (unmasked vld/vst), falling back to cdiv-padded tiles otherwise.
    """
    # Lane (last) dim: must be a multiple of 128 or the full extent.
    if lanes % 128 == 0 and lanes > 128:
        l_blk = _largest_dividing_multiple(lanes, 128, target_elems)
        if l_blk == 0:  # nothing both divides and is a multiple of 128
            l_blk = min(lanes, max(128, (target_elems // 128) * 128))
    else:
        l_blk = lanes

    # Sublane (second-to-last) dim: must be a multiple of 8 or the full extent.
    rows_budget = max(1, target_elems // max(l_blk, 1))
    if rows_budget >= rows:
        r_blk = rows
    else:
        r_blk = _largest_dividing_multiple(rows, 8, rows_budget)
        if r_blk == 0:
            r_blk = max(8, (rows_budget // 8) * 8)
            if r_blk >= rows:
                r_blk = rows
    return r_blk, l_blk


def pallas_image_normalize(x, mean, std):
    """(x - mean[c]) / std[c] over an (N)CHW tensor, as a Pallas TPU kernel."""
    if not jnp.issubdtype(x.dtype, jnp.floating):
        # torchvision Normalize expects a float tensor; guard integer images.
        x = x.astype(jnp.float32)

    squeeze_batch = False
    if x.ndim == 3:  # (C, H, W) -> treat as batch of one, like torchvision
        x = x[None]
        squeeze_batch = True
    if x.ndim != 4:
        raise ValueError(f"expected (C,H,W) or (N,C,H,W) input, got {x.shape}")

    N, C, H, W = x.shape
    out_dtype = x.dtype

    # Fold mean/std into scale/bias once at trace time (f32 regardless of x dtype).
    mean_f32 = jnp.broadcast_to(jnp.asarray(mean, jnp.float32).reshape(-1), (C,))
    std_f32 = jnp.broadcast_to(jnp.asarray(std, jnp.float32).reshape(-1), (C,))
    scale = 1.0 / std_f32
    bias = -mean_f32 / std_f32

    R, L = N * C, H * W
    x2d = x.reshape(R, L)                          # free view of contiguous NCHW
    scale_rows = jnp.tile(scale, N).reshape(R, 1)  # row r = n*C + c -> channel c
    bias_rows = jnp.tile(bias, N).reshape(R, 1)

    r_blk, l_blk = _pick_block(R, L)
    grid = (pl.cdiv(R, r_blk), pl.cdiv(L, l_blk))

    out2d = pl.pallas_call(
        _normalize_kernel,
        out_shape=jax.ShapeDtypeStruct((R, L), out_dtype),
        grid=grid,
        in_specs=[
            pl.BlockSpec((r_blk, l_blk), lambda i, j: (i, j)),  # x slab
            pl.BlockSpec((r_blk, 1), lambda i, j: (i, 0)),      # per-row scale
            pl.BlockSpec((r_blk, 1), lambda i, j: (i, 0)),      # per-row bias
        ],
        out_specs=pl.BlockSpec((r_blk, l_blk), lambda i, j: (i, j)),
        compiler_params=pltpu.CompilerParams(
            dimension_semantics=("parallel", "parallel")
        ),
    )(x2d, scale_rows, bias_rows)

    out = out2d.reshape(N, C, H, W)
    return out[0] if squeeze_batch else out


class ImageNormalize:
    """JAX/Pallas port of the PyTorch ImageNormalize module."""

    def __init__(self, opt, mean, std, conditional=True):
        self.opt = opt
        self.mean = mean
        self.std = std
        self.conditional = conditional

    def __call__(self, input_tensor):
        if self.conditional:
            # opt.transform in the original; accept dict or attr-style config.
            transform = (
                self.opt["transform"]
                if isinstance(self.opt, dict)
                else self.opt.transform
            )
            if "normalize" in transform:
                return pallas_image_normalize(input_tensor, self.mean, self.std)
            return input_tensor
        return pallas_image_normalize(input_tensor, self.mean, self.std)


if __name__ == "__main__":
    key = jax.random.PRNGKey(0)
    N, C, H, W = 2, 4, 16, 16
    x = jax.random.uniform(key, (N, C, H, W), dtype=jnp.float32)

    # Deterministic per-channel normalization parameters (synthetic).
    mean = [0.485, 0.456, 0.406, 0.5][:C]
    std = [0.229, 0.224, 0.225, 0.25][:C]

    opt = {"transform": ["resize", "normalize", "totensor"]}
    module = ImageNormalize(opt, mean, std, conditional=True)

    out = jax.block_until_ready(module(x))

    # Reference: plain JAX broadcasting of the original (x - mean) / std form.
    ref = (x - jnp.asarray(mean, jnp.float32)[None, :, None, None]) / jnp.asarray(
        std, jnp.float32
    )[None, :, None, None]
    assert out.shape == (N, C, H, W)
    # Note: kernel uses x*scale+bias (scale=1/std), which differs from
    # sub-then-div by a few f32 ULPs; 1e-5 tolerance covers that.
    assert jnp.allclose(out, ref, atol=1e-5, rtol=1e-5), float(
        jnp.max(jnp.abs(out - ref))
    )

    # Exercise the "no normalize in transforms" branch too (identity).
    module_id = ImageNormalize({"transform": ["resize"]}, mean, std, conditional=True)
    out_id = jax.block_until_ready(module_id(x))
    assert jnp.array_equal(out_id, x)

    # Unconditional path and 3-D (C, H, W) input, like torchvision.
    module_uncond = ImageNormalize({"transform": []}, mean, std, conditional=False)
    out3d = jax.block_until_ready(module_uncond(x[0]))
    assert out3d.shape == (C, H, W)
    assert jnp.allclose(out3d, ref[0], atol=1e-5, rtol=1e-5)

    print("KERNEL_OK")
</pallas_src>

<mosaic_0001>
module attributes {stable_mosaic.version = 11 : i64} {
  func.func @_normalize_kernel(%arg0: i32, %arg1: i32, %arg2: memref<8x256xf32, #tpu.memory_space<vmem>>, %arg3: memref<8x1xf32, #tpu.memory_space<vmem>>, %arg4: memref<8x1xf32, #tpu.memory_space<vmem>>, %arg5: memref<8x256xf32, #tpu.memory_space<vmem>>) attributes {dimension_semantics = [#tpu.dimension_semantics<parallel>, #tpu.dimension_semantics<parallel>], iteration_bounds = array<i64: 1, 1>, scalar_prefetch = 0 : i64, scratch_operands = 0 : i64, tpu.core_type = #tpu.core_type<tc>, window_params = [{transform_indices = @transform_0, window_bounds = array<i64: 8, 256>}, {transform_indices = @transform_1, window_bounds = array<i64: 8, 1>}, {transform_indices = @transform_2, window_bounds = array<i64: 8, 1>}, {transform_indices = @transform_3, window_bounds = array<i64: 8, 256>}]} {
    %c0 = arith.constant 0 : index
    %c0_0 = arith.constant 0 : index
    %0 = vector.load %arg2[%c0, %c0_0] : memref<8x256xf32, #tpu.memory_space<vmem>>, vector<8x256xf32>
    %c0_1 = arith.constant 0 : index
    %c0_2 = arith.constant 0 : index
    %1 = vector.load %arg3[%c0_1, %c0_2] : memref<8x1xf32, #tpu.memory_space<vmem>>, vector<8x1xf32>
    %2 = vector.broadcast %1 : vector<8x1xf32> to vector<8x256xf32>
    %3 = arith.mulf %0, %2 : vector<8x256xf32>
    %c0_3 = arith.constant 0 : index
    %c0_4 = arith.constant 0 : index
    %4 = vector.load %arg4[%c0_3, %c0_4] : memref<8x1xf32, #tpu.memory_space<vmem>>, vector<8x1xf32>
    %5 = vector.broadcast %4 : vector<8x1xf32> to vector<8x256xf32>
    %6 = arith.addf %3, %5 : vector<8x256xf32>
    %c0_5 = arith.constant 0 : index
    %c0_6 = arith.constant 0 : index
    %7 = vector.load %arg5[%c0_5, %c0_6] : memref<8x256xf32, #tpu.memory_space<vmem>>, vector<8x256xf32>
    tpu.vector_store %arg5[%c0_5, %c0_6], %6 {strides = array<i32>} : memref<8x256xf32, #tpu.memory_space<vmem>>, vector<8x256xf32>,
    return
  }
  func.func @transform_0(%arg0: i32, %arg1: i32) -> (i32, i32) {
    %c0_i32 = arith.constant 0 : i32
    return %arg0, %arg1 : i32, i32
  }
  func.func @transform_1(%arg0: i32, %arg1: i32) -> (i32, i32) {
    %c0_i32 = arith.constant 0 : i32
    %c0_i32_0 = arith.constant 0 : i32
    return %arg0, %c0_i32 : i32, i32
  }
  func.func @transform_2(%arg0: i32, %arg1: i32) -> (i32, i32) {
    %c0_i32 = arith.constant 0 : i32
    %c0_i32_0 = arith.constant 0 : i32
    return %arg0, %c0_i32 : i32, i32
  }
  func.func @transform_3(%arg0: i32, %arg1: i32) -> (i32, i32) {
    %c0_i32 = arith.constant 0 : i32
    return %arg0, %arg1 : i32, i32
  }
}

</mosaic_0001>

<bundles_post_ra>
// kernel: tpu_custom_call.1
= control target key start
LH: loop header
LB: loop body
LE: loop exit
PB: predicated region body
PF: predicated region fallthrough
CT: control target
= control target key end

     0   :  { %s122_s0 = inlined_call_operand.vmem [shape: f32[8,256], index: 0, kind: input, shape index: {}]   ;;  %s123_s1 = inlined_call_operand.vmem [shape: f32[8,1], index: 1, kind: input, shape index: {}]   ;;  %s124_s2 = inlined_call_operand.vmem [shape: f32[8,1], index: 2, kind: input, shape index: {}]   ;;  %s125_s3 = inlined_call_operand.hbm [shape: f32[8,256], index: 3, kind: output, shape index: {}]  }
   0x1   :  { %v17_v0 = vld [vmem:[%s123_s1] sm:$0xff] }
   0x2   :  { %8 = vsyncpa [#allocation3], 0  ;;  %v76_v1 = vmov 0   ;;  %v25_v2 = vld [vmem:[%s124_s2] sm:$0xff]  ;;  %v16_v5 = vld [vmem:[%s122_s0 + $0x8] sm:$0xff]  ;;  %s77_s20 = smov [#allocation2]  }
   0x3   :  { %51 = vset.pattern.permute.xlu0 %v76_v1  ;;  %v15_v4 = vld [vmem:[%s122_s0] sm:$0xff]  ;;  %s41_s1 = sshll.u32 %s77_s20, 4  ;;  %s42_s1 = int_to_ptr.vmem [resolvable:$true] %s41_s1 }
   0x4   :  { %20 = vperm.xlu0 %51, %v17_v0   ;;  %s52_s2 = scalar_lea.vmem %s42_s1, 256  ;;  %p57_p1 = scmp.lt.s32.totalorder %s42_s1, %s42_s1 }
   0x5   :  { %p53_p0 = scmp.ne.s32.totalorder %s42_s1, %s52_s2  ;;  %p58_p2 = scmp.lt.s32.totalorder %s52_s2, %s52_s2 }
   0x7   :  { %p59_p3 = por %p58_p2, %p57_p1 }
   0x8   :  { %28 = vperm.xlu0 %51, %v25_v2  }
   0x9   :  { %p60_p4 = pnand %p59_p3, %p53_p0 }
  0x83   :  { %v21_v3 = vpop.permute.xlu0 %20 }
  0x84   :  { %v23_v6 = vmul.f32 %v21_v3, %v15_v4  ;;  %v24_v7 = vmul.f32 %v21_v3, %v16_v5 }
  0x87   :  { %v29_v8 = vpop.permute.xlu0 %28 }
  0x88   :  { %v31_v9 = vadd.f32 %v29_v8, %v23_v6  ;;  %v32_v10 = vadd.f32 %v29_v8, %v24_v7 }
  0x8a   :  { %33 = vst [vmem:[#allocation2] sm:$0xff] %v31_v9  ;;  %34 = vst [vmem:[#allocation2 + $0x8] sm:$0xff] %v32_v10 }
  0x8b   :  { %63 = shalt.err (!%p60_p4)
}
  0x8c   :  { %s64_s0 = scalar_lea.hbm %s125_s3, 256 }
  0x8d   :  { %p65_p5 = scmp.ne.s32.totalorder %s125_s3, %s64_s0  ;;  %p68_p6 = scmp.lt.u32.totalorder %s64_s0, %s125_s3 }
  0x8f   :  { %p70_p7 = pnand %p68_p6, %p65_p5 }
  0x91   :  { %73 = shalt.err (!%p70_p7)
}
  0x92   :  { %44 = dma.vmem_to_hbm [thread:$0]  %s42_s1, 256, %s125_s3, [#allocation3]  }
  0x93   :  { %74 = dma.done.wait [#allocation3], 256  }
  0x94   :  { %75 = vsyncadd [#allocation3], 4294967040 }
  0x95   :  { %48 = vsyncpa [#allocation3], 1 }

</bundles_post_ra>
